<compile_context>
chip_gen: v6e
topology: v6e:2x2x1
jax: 0.10.0
libtpu: 0.0.40
codegen_flags: <defaults>
</compile_context>

<pallas_src>
import functools

import jax
import jax.numpy as jnp
from jax import lax
from jax.experimental import pallas as pl
from jax.experimental.pallas import tpu as pltpu


# ---------------------------------------------------------------------------
# Capability / sizing helpers
# ---------------------------------------------------------------------------
def _round_up(v, m):
    return ((v + m - 1) // m) * m


def _vmem_ceiling_bytes():
    """Scoped-VMEM ceiling: physical VMEM minus headroom for compiler scratch."""
    try:
        phys = int(pltpu.get_tpu_info().vmem_capacity_bytes)
    except Exception:
        phys = 64 << 20            # conservative default (v7x-class 64 MiB part)
    return max(32 << 20, phys - (16 << 20))


def _vmem_limit_bytes(need, ceiling):
    return int(min(ceiling, max(16 << 20, need)))


def _pick_tile_l(L_pad, C, vmem_ceiling):
    """Adaptive L-tile: big enough to amortize ~0.35us/grid-step overhead at
    small C, capped so ~6 live C*tile_l f32 blocks stay within budget at large C."""
    budget = min(40 << 20, vmem_ceiling // 2)
    cap = budget // max(1, 6 * C * 4)
    cap = max(128, cap - cap % 128)
    if C <= 64:
        cap = max(cap, 4096)
    cap = min(cap, 8192)
    t = min(cap, L_pad)
    t -= t % 128
    t = max(t, 128)
    while L_pad % t:
        t -= 128
    return t


def _probe_kernel(x_ref, o_ref):
    o_ref[...] = x_ref[...] + 1.0


@functools.lru_cache(maxsize=None)
def _single_buffer_ok():
    """Probe whether pipeline_mode=pl.Buffered(1) compiles (single-buffered
    grid-constant operands reclaim VMEM; matters most on v7x's 64 MiB)."""
    try:
        spec = pl.BlockSpec((8, 128), lambda i: (0, 0), pipeline_mode=pl.Buffered(1))
        f = pl.pallas_call(
            _probe_kernel,
            out_shape=jax.ShapeDtypeStruct((8, 128), jnp.float32),
            grid=(1,),
            in_specs=[spec],
            out_specs=pl.BlockSpec((8, 128), lambda i: (0, 0)))
        jax.jit(f).lower(jnp.zeros((8, 128), jnp.float32)).compile()
        return True
    except Exception:
        return False


def _const_spec(shape):
    """Grid-constant operand: VMEM resident; single-buffered when supported."""
    idx = lambda n, lt: (0,) * len(shape)
    if _single_buffer_ok():
        return pl.BlockSpec(shape, idx, pipeline_mode=pl.Buffered(1))
    return pl.BlockSpec(shape, idx)


# ---------------------------------------------------------------------------
# Pass A: per L-tile projections + resident accumulators
#   xns[n] += xs @ xp^T,  Gram[n] += xp @ xp^T,  psum[n] += sum_l xp
# ---------------------------------------------------------------------------
def _proj_gram_kernel(x_ref, ws_ref, bs_ref, wp_ref, bp_ref,
                      xns_ref, g_ref, p_ref, *, compute_dtype, l_true):
    lt = pl.program_id(1)
    tile_l = x_ref.shape[-1]

    x = x_ref[0].astype(compute_dtype)                                    # (C, TL)
    # 1x1 convs == channel matmuls (MXU, f32 accumulation); biases stay f32.
    xs = jnp.dot(ws_ref[...], x, preferred_element_type=jnp.float32) + bs_ref[...]
    xp = jnp.dot(wp_ref[...], x, preferred_element_type=jnp.float32) + bp_ref[...]

    if l_true % tile_l:   # static: L was padded -> mask pad lanes out of the sums
        lane = lax.broadcasted_iota(jnp.int32, (1, tile_l), 1)
        valid = (lt * tile_l + lane) < l_true
        xs = jnp.where(valid, xs, 0.0)
        xp = jnp.where(valid, xp, 0.0)

    xs_c = xs.astype(compute_dtype)
    xp_c = xp.astype(compute_dtype)
    # Lane-axis contractions; the smaller (Nn, TL) operand sits on the RHS so the
    # XLU transpose work is minimal and overlaps the MXU pushes.
    part_xns = lax.dot_general(xs_c, xp_c, (((1,), (1,)), ((), ())),
                               preferred_element_type=jnp.float32)        # (S, Nn)
    part_g = lax.dot_general(xp_c, xp_c, (((1,), (1,)), ((), ())),
                             preferred_element_type=jnp.float32)          # (Nn, Nn)
    part_p = jnp.sum(xp, axis=1, keepdims=True)                           # (Nn, 1)

    @pl.when(lt == 0)
    def _():
        xns_ref[...] = jnp.zeros_like(xns_ref)
        g_ref[...] = jnp.zeros_like(g_ref)
        p_ref[...] = jnp.zeros_like(p_ref)

    xns_ref[0] += part_xns
    g_ref[0] += part_g
    p_ref[0] += part_p


# ---------------------------------------------------------------------------
# Pass B: recompute ext per L-tile, fused BatchNorm affine + residual, in place
# ---------------------------------------------------------------------------
def _bn_residual_kernel(x_ref, m_ref, wp_ref, bp_ref, scale_ref, shift_ref,
                        o_ref, *, compute_dtype):
    x = x_ref[0]                                                          # (C, TL)
    xc = x.astype(compute_dtype)
    xp = jnp.dot(wp_ref[...], xc, preferred_element_type=jnp.float32) + bp_ref[...]
    ext = jnp.dot(m_ref[0], xp.astype(compute_dtype),
                  preferred_element_type=jnp.float32)                     # (C, TL)
    # out = x + gamma*(ext-mean)*rstd + beta, folded into scale/shift (f32 math)
    out = x.astype(jnp.float32) + ext * scale_ref[...] + shift_ref[...]
    o_ref[0] = out.astype(o_ref.dtype)


# ---------------------------------------------------------------------------
# Wrapper
# ---------------------------------------------------------------------------
@functools.partial(jax.jit, static_argnames=("tile_l", "compute_dtype"))
def glore_unit_pallas(x_nchw, params, *, tile_l=None, compute_dtype=jnp.float32):
    N, C, H, W = x_nchw.shape
    L = H * W
    L_pad = _round_up(L, 128)
    S = params['ws'].shape[0]       # num_s = 2 * num_mid
    Nn = params['wp'].shape[0]      # num_n = num_mid

    ceiling = _vmem_ceiling_bytes()
    if tile_l is None:
        tile_l = _pick_tile_l(L_pad, C, ceiling)
    assert L_pad % tile_l == 0 and tile_l % 128 == 0, "tile_l must divide padded L"
    n_lt = L_pad // tile_l

    f32 = jnp.float32
    cdt = compute_dtype

    # x stays in its native dtype (no wrapper-side f32 HBM copy); pad L to a
    # lane-dense multiple of 128 so stores are unmasked and the L axis pipelines.
    x_flat = x_nchw.reshape(N, C, L)
    if L_pad != L:
        x_flat = jnp.pad(x_flat, ((0, 0), (0, 0), (0, L_pad - L)))

    # Pre-cast the 1x1-conv weights once (hoists per-grid-step VALU casts).
    ws = params['ws'].astype(cdt)
    wp = params['wp'].astype(cdt)
    bs = params['bs'].reshape(S, 1).astype(f32)
    bp = params['bp'].reshape(Nn, 1).astype(f32)

    grid = (N, n_lt)
    x_spec = pl.BlockSpec((1, C, tile_l), lambda n, lt: (n, 0, lt))

    x_item = jnp.dtype(x_flat.dtype).itemsize
    c_item = jnp.dtype(cdt).itemsize
    x_blk = C * tile_l * x_item
    w_blk = (S * C + Nn * C) * c_item + (S + Nn) * 4
    inter = (S + Nn) * tile_l * (4 + c_item)
    acc = (S * Nn + Nn * Nn + Nn) * 4

    # ---- Pass A: xns / Gram(xp) / sum(xp) accumulated over L-tiles ----------
    # TODO(synk): on v7x (2 TensorCores) add a second "parallel" L-split grid
    # axis at small N so both cores get work, reducing partial accumulators in
    # the glue.
    xns, gram, psum = pl.pallas_call(
        functools.partial(_proj_gram_kernel, compute_dtype=cdt, l_true=L),
        out_shape=(jax.ShapeDtypeStruct((N, S, Nn), f32),
                   jax.ShapeDtypeStruct((N, Nn, Nn), f32),
                   jax.ShapeDtypeStruct((N, Nn, 1), f32)),
        grid=grid,
        in_specs=[x_spec, _const_spec((S, C)), _const_spec((S, 1)),
                  _const_spec((Nn, C)), _const_spec((Nn, 1))],
        out_specs=(pl.BlockSpec((1, S, Nn), lambda n, lt: (n, 0, 0)),
                   pl.BlockSpec((1, Nn, Nn), lambda n, lt: (n, 0, 0)),
                   pl.BlockSpec((1, Nn, 1), lambda n, lt: (n, 0, 0))),
        compiler_params=pltpu.CompilerParams(
            dimension_semantics=("parallel", "arbitrary"),
            vmem_limit_bytes=_vmem_limit_bytes(
                2 * x_blk + w_blk + 2 * inter + 2 * acc + (8 << 20), ceiling)),
    )(x_flat, ws, bs, wp, bp)

    # ---- Tiny GCN + fold conv_extend into the node basis (plain JAX) --------
    w1 = params['w1'].astype(f32)
    b1 = params['b1'].astype(f32)
    w2 = params['w2'].astype(f32)
    we = params['we'].astype(f32)
    h = jnp.einsum('nsk,ik->nsi', xns, w1) + b1[None, None, :]   # gcn.conv1 (+bias)
    h = jax.nn.relu(h + xns)                                      # residual + ReLU
    xnr = jnp.einsum('st,ntk->nsk', w2, h)                        # gcn.conv2 (no bias)
    m = jnp.einsum('cs,nsk->nck', we, xnr)                        # (N, C, Nn); ext = m @ xp

    # ---- BN batch statistics from the Gram matrix (no second pass over x) ---
    #   sum_l ext = m @ (sum_l xp),   sum_l ext^2 = rowwise m . Gram . m^T
    sums = jnp.einsum('nck,nk->nc', m, psum[:, :, 0])             # (N, C)
    sqs = jnp.einsum('nck,nkj,ncj->nc', m, gram, m)               # (N, C)
    count = float(N * L)                                          # true pixel count
    mean = jnp.sum(sums, axis=0) / count
    var = jnp.maximum(jnp.sum(sqs, axis=0) / count - mean * mean, 0.0)
    # TODO(synk): if BN stats prove sensitive at real weight scales, subtract a
    # per-channel pilot mean before accumulating (E[x^2]-E[x]^2 cancellation).
    rstd = lax.rsqrt(var + 1e-4)
    gamma = params['gamma'].astype(f32)
    beta = params['beta'].astype(f32)
    scale = (gamma * rstd).reshape(C, 1)
    shift = (beta - gamma * mean * rstd).reshape(C, 1)

    m_c = m.astype(cdt)                                           # pre-cast once
    m_spec = pl.BlockSpec((1, C, Nn), lambda n, lt: (n, 0, 0))
    m_blk = C * Nn * c_item
    interB = Nn * tile_l * (4 + c_item) + C * tile_l * 4

    # ---- Pass B: recompute ext per tile, fused BN + residual, in place ------
    out_flat = pl.pallas_call(
        functools.partial(_bn_residual_kernel, compute_dtype=cdt),
        out_shape=jax.ShapeDtypeStruct((N, C, L_pad), x_flat.dtype),
        grid=grid,
        in_specs=[x_spec, m_spec, _const_spec((Nn, C)), _const_spec((Nn, 1)),
                  _const_spec((C, 1)), _const_spec((C, 1))],
        out_specs=pl.BlockSpec((1, C, tile_l), lambda n, lt: (n, 0, lt)),
        input_output_aliases={0: 0},
        compiler_params=pltpu.CompilerParams(
            dimension_semantics=("parallel", "parallel"),
            vmem_limit_bytes=_vmem_limit_bytes(
                4 * x_blk + 2 * m_blk + Nn * C * c_item + 2 * interB + (8 << 20),
                ceiling)),
    )(x_flat, m_c, wp, bp, scale, shift)

    out = out_flat[:, :, :L] if L_pad != L else out_flat
    return out.reshape(N, C, H, W)


def glore_reference(x, p):
    """Pure-JAX reference mirroring the PyTorch forward (NCHW, f32)."""
    N, C, H, W = x.shape
    S = p['ws'].shape[0]
    Nn = p['wp'].shape[0]
    xs = jnp.einsum('nchw,sc->nshw', x, p['ws']) + p['bs'][None, :, None, None]
    xp = jnp.einsum('nchw,kc->nkhw', x, p['wp']) + p['bp'][None, :, None, None]
    xs = xs.reshape(N, S, H * W)
    xp = xp.reshape(N, Nn, H * W)
    xns = jnp.einsum('nsl,nkl->nsk', xs, xp)
    h = jnp.einsum('nsk,ik->nsi', xns, p['w1']) + p['b1'][None, None, :]
    h = jax.nn.relu(h + xns)
    xnr = jnp.einsum('st,ntk->nsk', p['w2'], h)
    xsr = jnp.einsum('nsk,nkl->nsl', xnr, xp)
    ext = jnp.einsum('cs,nsl->ncl', p['we'], xsr).reshape(N, C, H, W)
    mean = ext.mean(axis=(0, 2, 3))
    var = ext.var(axis=(0, 2, 3))
    xhat = (ext - mean[None, :, None, None]) / jnp.sqrt(var[None, :, None, None] + 1e-4)
    return x + p['gamma'][None, :, None, None] * xhat + p['beta'][None, :, None, None]


if __name__ == "__main__":
    key = jax.random.PRNGKey(0)
    C = 4                               # num_in
    num_mid = 4
    S, Nn = 2 * num_mid, num_mid        # num_s = 8, num_n = 4

    ks = jax.random.split(key, 10)
    params = {
        'ws': 0.1 * jax.random.normal(ks[0], (S, C), jnp.float32),    # conv_state.weight
        'bs': 0.1 * jax.random.normal(ks[1], (S,), jnp.float32),      # conv_state.bias
        'wp': 0.1 * jax.random.normal(ks[2], (Nn, C), jnp.float32),   # conv_proj.weight
        'bp': 0.1 * jax.random.normal(ks[3], (Nn,), jnp.float32),     # conv_proj.bias
        'w1': 0.1 * jax.random.normal(ks[4], (Nn, Nn), jnp.float32),  # gcn.conv1.weight
        'b1': 0.1 * jax.random.normal(ks[5], (Nn,), jnp.float32),     # gcn.conv1.bias
        'w2': 0.1 * jax.random.normal(ks[6], (S, S), jnp.float32),    # gcn.conv2.weight
        'we': 0.1 * jax.random.normal(ks[7], (C, S), jnp.float32),    # conv_extend.weight
        'gamma': jnp.ones((C,), jnp.float32),                          # blocker.weight
        'beta': jnp.zeros((C,), jnp.float32),                          # blocker.bias
    }

    ok = True

    # Case 1: L = 16*16 = 256 (lane-aligned); tile_l=128 -> 2 L-tiles exercises
    # the resident-accumulator pipeline.  Checked strictly vs the f32 reference.
    x1 = jax.random.normal(ks[8], (2, C, 16, 16), jnp.float32)
    out1 = jax.block_until_ready(glore_unit_pallas(x1, params, tile_l=128))
    err1 = float(jnp.max(jnp.abs(out1 - glore_reference(x1, params))))
    ok = ok and out1.shape == x1.shape and err1 < 1e-3

    # Case 2: L = 14*14 = 196 (not a 128 multiple) -> exercises the lane-padding
    # + pad-mask path for the Gram-based BN stats (last L-tile partially valid).
    x2 = jax.random.normal(ks[9], (2, C, 14, 14), jnp.float32)
    out2 = jax.block_until_ready(glore_unit_pallas(x2, params, tile_l=128))
    err2 = float(jnp.max(jnp.abs(out2 - glore_reference(x2, params))))
    ok = ok and out2.shape == x2.shape and err2 < 1e-3

    # Case 3: bf16-input MXU path (v6e/v7x throughput path): compile/run sanity
    # only — it intentionally trades precision for MXU throughput.
    out3 = jax.block_until_ready(
        glore_unit_pallas(x1, params, tile_l=128, compute_dtype=jnp.bfloat16))
    ok = ok and bool(jnp.all(jnp.isfinite(out3))) and out3.shape == x1.shape

    if ok:
        print("KERNEL_OK")
    else:
        print(f"MISMATCH err1={err1} err2={err2}")
</pallas_src>

<mosaic_0001>
module attributes {stable_mosaic.version = 11 : i64} {
  func.func @_bn_residual_kernel(%arg0: i32, %arg1: i32, %arg2: memref<1x4x128xf32, #tpu.memory_space<vmem>>, %arg3: memref<1x4x4xf32, #tpu.memory_space<vmem>>, %arg4: memref<4x4xf32, #tpu.memory_space<vmem>>, %arg5: memref<4x1xf32, #tpu.memory_space<vmem>>, %arg6: memref<4x1xf32, #tpu.memory_space<vmem>>, %arg7: memref<4x1xf32, #tpu.memory_space<vmem>>, %arg8: memref<1x4x128xf32, #tpu.memory_space<vmem>>) attributes {dimension_semantics = [#tpu.dimension_semantics<parallel>, #tpu.dimension_semantics<parallel>], iteration_bounds = array<i64: 2, 2>, scalar_prefetch = 0 : i64, scratch_operands = 0 : i64, tpu.core_type = #tpu.core_type<tc>, window_params = [{transform_indices = @transform_0, window_bounds = array<i64: 1, 4, 128>}, {transform_indices = @transform_1, window_bounds = array<i64: 1, 4, 4>}, {pipeline_mode = #tpu.pipeline_mode<synchronous>, transform_indices = @transform_2, window_bounds = array<i64: 4, 4>}, {pipeline_mode = #tpu.pipeline_mode<synchronous>, transform_indices = @transform_3, window_bounds = array<i64: 4, 1>}, {pipeline_mode = #tpu.pipeline_mode<synchronous>, transform_indices = @transform_4, window_bounds = array<i64: 4, 1>}, {pipeline_mode = #tpu.pipeline_mode<synchronous>, transform_indices = @transform_5, window_bounds = array<i64: 4, 1>}, {transform_indices = @transform_6, window_bounds = array<i64: 1, 4, 128>}]} {
    %c0 = arith.constant 0 : index
    %c0_0 = arith.constant 0 : index
    %c0_1 = arith.constant 0 : index
    %0 = vector.load %arg2[%c0, %c0_0, %c0_1] : memref<1x4x128xf32, #tpu.memory_space<vmem>>, vector<1x4x128xf32>
    %1 = vector.shape_cast %0 : vector<1x4x128xf32> to vector<4x128xf32>
    %c0_2 = arith.constant 0 : index
    %c0_3 = arith.constant 0 : index
    %2 = vector.load %arg4[%c0_2, %c0_3] : memref<4x4xf32, #tpu.memory_space<vmem>>, vector<4x4xf32>
    %cst = arith.constant dense<0.000000e+00> : vector<4x128xf32>
    %3 = tpu.matmul %2, %1, %cst {dimension_numbers = #tpu.dot_dimension_numbers<[1], [0], [0], [1], [0, 0, 1, 1], [], []>} : vector<4x4xf32>, vector<4x128xf32>, vector<4x128xf32> -> vector<4x128xf32>
    %c0_4 = arith.constant 0 : index
    %c0_5 = arith.constant 0 : index
    %4 = vector.load %arg5[%c0_4, %c0_5] : memref<4x1xf32, #tpu.memory_space<vmem>>, vector<4x1xf32>
    %5 = vector.broadcast %4 : vector<4x1xf32> to vector<4x128xf32>
    %6 = arith.addf %3, %5 : vector<4x128xf32>
    %c0_6 = arith.constant 0 : index
    %c0_7 = arith.constant 0 : index
    %c0_8 = arith.constant 0 : index
    %7 = vector.load %arg3[%c0_6, %c0_7, %c0_8] : memref<1x4x4xf32, #tpu.memory_space<vmem>>, vector<1x4x4xf32>
    %8 = vector.shape_cast %7 : vector<1x4x4xf32> to vector<4x4xf32>
    %cst_9 = arith.constant dense<0.000000e+00> : vector<4x128xf32>
    %9 = tpu.matmul %8, %6, %cst_9 {dimension_numbers = #tpu.dot_dimension_numbers<[1], [0], [0], [1], [0, 0, 1, 1], [], []>} : vector<4x4xf32>, vector<4x128xf32>, vector<4x128xf32> -> vector<4x128xf32>
    %c0_10 = arith.constant 0 : index
    %c0_11 = arith.constant 0 : index
    %10 = vector.load %arg6[%c0_10, %c0_11] : memref<4x1xf32, #tpu.memory_space<vmem>>, vector<4x1xf32>
    %11 = vector.broadcast %10 : vector<4x1xf32> to vector<4x128xf32>
    %12 = arith.mulf %9, %11 : vector<4x128xf32>
    %13 = arith.addf %1, %12 : vector<4x128xf32>
    %c0_12 = arith.constant 0 : index
    %c0_13 = arith.constant 0 : index
    %14 = vector.load %arg7[%c0_12, %c0_13] : memref<4x1xf32, #tpu.memory_space<vmem>>, vector<4x1xf32>
    %15 = vector.broadcast %14 : vector<4x1xf32> to vector<4x128xf32>
    %16 = arith.addf %13, %15 : vector<4x128xf32>
    %c0_14 = arith.constant 0 : index
    %c0_15 = arith.constant 0 : index
    %c0_16 = arith.constant 0 : index
    %17 = vector.load %arg8[%c0_14, %c0_15, %c0_16] : memref<1x4x128xf32, #tpu.memory_space<vmem>>, vector<1x4x128xf32>
    %18 = vector.shape_cast %17 : vector<1x4x128xf32> to vector<4x128xf32>
    %19 = vector.shape_cast %16 : vector<4x128xf32> to vector<1x4x128xf32>
    tpu.vector_store %arg8[%c0_14, %c0_15, %c0_16], %19 {strides = array<i32>} : memref<1x4x128xf32, #tpu.memory_space<vmem>>, vector<1x4x128xf32>,
    return
  }
  func.func @transform_0(%arg0: i32, %arg1: i32) -> (i32, i32, i32) {
    %c0_i32 = arith.constant 0 : i32
    %c0_i32_0 = arith.constant 0 : i32
    return %arg0, %c0_i32, %arg1 : i32, i32, i32
  }
  func.func @transform_1(%arg0: i32, %arg1: i32) -> (i32, i32, i32) {
    %c0_i32 = arith.constant 0 : i32
    %c0_i32_0 = arith.constant 0 : i32
    %c0_i32_1 = arith.constant 0 : i32
    return %arg0, %c0_i32, %c0_i32_0 : i32, i32, i32
  }
  func.func @transform_2(%arg0: i32, %arg1: i32) -> (i32, i32) {
    %c0_i32 = arith.constant 0 : i32
    %c0_i32_0 = arith.constant 0 : i32
    %c0_i32_1 = arith.constant 0 : i32
    return %c0_i32, %c0_i32_0 : i32, i32
  }
  func.func @transform_3(%arg0: i32, %arg1: i32) -> (i32, i32) {
    %c0_i32 = arith.constant 0 : i32
    %c0_i32_0 = arith.constant 0 : i32
    %c0_i32_1 = arith.constant 0 : i32
    return %c0_i32, %c0_i32_0 : i32, i32
  }
  func.func @transform_4(%arg0: i32, %arg1: i32) -> (i32, i32) {
    %c0_i32 = arith.constant 0 : i32
    %c0_i32_0 = arith.constant 0 : i32
    %c0_i32_1 = arith.constant 0 : i32
    return %c0_i32, %c0_i32_0 : i32, i32
  }
  func.func @transform_5(%arg0: i32, %arg1: i32) -> (i32, i32) {
    %c0_i32 = arith.constant 0 : i32
    %c0_i32_0 = arith.constant 0 : i32
    %c0_i32_1 = arith.constant 0 : i32
    return %c0_i32, %c0_i32_0 : i32, i32
  }
  func.func @transform_6(%arg0: i32, %arg1: i32) -> (i32, i32, i32) {
    %c0_i32 = arith.constant 0 : i32
    %c0_i32_0 = arith.constant 0 : i32
    return %arg0, %c0_i32, %arg1 : i32, i32, i32
  }
}

module attributes {stable_mosaic.version = 11 : i64} {
  func.func @_proj_gram_kernel(%arg0: i32, %arg1: i32, %arg2: memref<1x4x128xf32, #tpu.memory_space<vmem>>, %arg3: memref<8x4xf32, #tpu.memory_space<vmem>>, %arg4: memref<8x1xf32, #tpu.memory_space<vmem>>, %arg5: memref<4x4xf32, #tpu.memory_space<vmem>>, %arg6: memref<4x1xf32, #tpu.memory_space<vmem>>, %arg7: memref<1x8x4xf32, #tpu.memory_space<vmem>>, %arg8: memref<1x4x4xf32, #tpu.memory_space<vmem>>, %arg9: memref<1x4x1xf32, #tpu.memory_space<vmem>>) attributes {dimension_semantics = [#tpu.dimension_semantics<parallel>, #tpu.dimension_semantics<arbitrary>], iteration_bounds = array<i64: 2, 2>, scalar_prefetch = 0 : i64, scratch_operands = 0 : i64, tpu.core_type = #tpu.core_type<tc>, window_params = [{transform_indices = @transform_0, window_bounds = array<i64: 1, 4, 128>}, {pipeline_mode = #tpu.pipeline_mode<synchronous>, transform_indices = @transform_1, window_bounds = array<i64: 8, 4>}, {pipeline_mode = #tpu.pipeline_mode<synchronous>, transform_indices = @transform_2, window_bounds = array<i64: 8, 1>}, {pipeline_mode = #tpu.pipeline_mode<synchronous>, transform_indices = @transform_3, window_bounds = array<i64: 4, 4>}, {pipeline_mode = #tpu.pipeline_mode<synchronous>, transform_indices = @transform_4, window_bounds = array<i64: 4, 1>}, {transform_indices = @transform_5, window_bounds = array<i64: 1, 8, 4>}, {transform_indices = @transform_6, window_bounds = array<i64: 1, 4, 4>}, {transform_indices = @transform_7, window_bounds = array<i64: 1, 4, 1>}]} {
    %c0 = arith.constant 0 : index
    %c0_0 = arith.constant 0 : index
    %c0_1 = arith.constant 0 : index
    %0 = vector.load %arg2[%c0, %c0_0, %c0_1] : memref<1x4x128xf32, #tpu.memory_space<vmem>>, vector<1x4x128xf32>
    %1 = vector.shape_cast %0 : vector<1x4x128xf32> to vector<4x128xf32>
    %c0_2 = arith.constant 0 : index
    %c0_3 = arith.constant 0 : index
    %2 = vector.load %arg3[%c0_2, %c0_3] : memref<8x4xf32, #tpu.memory_space<vmem>>, vector<8x4xf32>
    %cst = arith.constant dense<0.000000e+00> : vector<8x128xf32>
    %3 = tpu.matmul %2, %1, %cst {dimension_numbers = #tpu.dot_dimension_numbers<[1], [0], [0], [1], [0, 0, 1, 1], [], []>} : vector<8x4xf32>, vector<4x128xf32>, vector<8x128xf32> -> vector<8x128xf32>
    %c0_4 = arith.constant 0 : index
    %c0_5 = arith.constant 0 : index
    %4 = vector.load %arg4[%c0_4, %c0_5] : memref<8x1xf32, #tpu.memory_space<vmem>>, vector<8x1xf32>
    %5 = vector.broadcast %4 : vector<8x1xf32> to vector<8x128xf32>
    %6 = arith.addf %3, %5 : vector<8x128xf32>
    %c0_6 = arith.constant 0 : index
    %c0_7 = arith.constant 0 : index
    %7 = vector.load %arg5[%c0_6, %c0_7] : memref<4x4xf32, #tpu.memory_space<vmem>>, vector<4x4xf32>
    %cst_8 = arith.constant dense<0.000000e+00> : vector<4x128xf32>
    %8 = tpu.matmul %7, %1, %cst_8 {dimension_numbers = #tpu.dot_dimension_numbers<[1], [0], [0], [1], [0, 0, 1, 1], [], []>} : vector<4x4xf32>, vector<4x128xf32>, vector<4x128xf32> -> vector<4x128xf32>
    %c0_9 = arith.constant 0 : index
    %c0_10 = arith.constant 0 : index
    %9 = vector.load %arg6[%c0_9, %c0_10] : memref<4x1xf32, #tpu.memory_space<vmem>>, vector<4x1xf32>
    %10 = vector.broadcast %9 : vector<4x1xf32> to vector<4x128xf32>
    %11 = arith.addf %8, %10 : vector<4x128xf32>
    %cst_11 = arith.constant dense<0.000000e+00> : vector<8x4xf32>
    %12 = tpu.matmul %6, %11, %cst_11 {dimension_numbers = #tpu.dot_dimension_numbers<[1], [1], [0], [0], [0, 0, 1, 0], [], []>} : vector<8x128xf32>, vector<4x128xf32>, vector<8x4xf32> -> vector<8x4xf32>
    %cst_12 = arith.constant dense<0.000000e+00> : vector<4x4xf32>
    %13 = tpu.matmul %11, %11, %cst_12 {dimension_numbers = #tpu.dot_dimension_numbers<[1], [1], [0], [0], [0, 0, 1, 0], [], []>} : vector<4x128xf32>, vector<4x128xf32>, vector<4x4xf32> -> vector<4x4xf32>
    %cst_13 = arith.constant dense<0.000000e+00> : vector<4xf32>
    %14 = vector.multi_reduction <add>, %11, %cst_13 [1] : vector<4x128xf32> to vector<4xf32>
    %15 = vector.shape_cast %14 : vector<4xf32> to vector<4x1xf32>
    %c0_i32 = arith.constant 0 : i32
    %16 = arith.cmpi eq, %arg1, %c0_i32 : i32
    %17 = arith.extui %16 : i1 to i32
    %c0_i32_14 = arith.constant 0 : i32
    %18 = arith.cmpi ne, %17, %c0_i32_14 : i32
    scf.if %18 {
      %cst_33 = arith.constant 0.000000e+00 : f32
      %37 = vector.broadcast %cst_33 : f32 to vector<1x8x4xf32>
      %c0_34 = arith.constant 0 : index
      %c0_35 = arith.constant 0 : index
      %c0_36 = arith.constant 0 : index
      %38 = vector.load %arg7[%c0_34, %c0_35, %c0_36] : memref<1x8x4xf32, #tpu.memory_space<vmem>>, vector<1x8x4xf32>
      tpu.vector_store %arg7[%c0_34, %c0_35, %c0_36], %37 {strides = array<i32>} : memref<1x8x4xf32, #tpu.memory_space<vmem>>, vector<1x8x4xf32>,
      %cst_37 = arith.constant 0.000000e+00 : f32
      %39 = vector.broadcast %cst_37 : f32 to vector<1x4x4xf32>
      %c0_38 = arith.constant 0 : index
      %c0_39 = arith.constant 0 : index
      %c0_40 = arith.constant 0 : index
      %40 = vector.load %arg8[%c0_38, %c0_39, %c0_40] : memref<1x4x4xf32, #tpu.memory_space<vmem>>, vector<1x4x4xf32>
      tpu.vector_store %arg8[%c0_38, %c0_39, %c0_40], %39 {strides = array<i32>} : memref<1x4x4xf32, #tpu.memory_space<vmem>>, vector<1x4x4xf32>,
      %cst_41 = arith.constant 0.000000e+00 : f32
      %41 = vector.broadcast %cst_41 : f32 to vector<1x4x1xf32>
      %c0_42 = arith.constant 0 : index
      %c0_43 = arith.constant 0 : index
      %c0_44 = arith.constant 0 : index
      %42 = vector.load %arg9[%c0_42, %c0_43, %c0_44] : memref<1x4x1xf32, #tpu.memory_space<vmem>>, vector<1x4x1xf32>
      tpu.vector_store %arg9[%c0_42, %c0_43, %c0_44], %41 {strides = array<i32>} : memref<1x4x1xf32, #tpu.memory_space<vmem>>, vector<1x4x1xf32>,
    } else {
    }
    %c0_15 = arith.constant 0 : index
    %c0_16 = arith.constant 0 : index
    %c0_17 = arith.constant 0 : index
    %19 = vector.load %arg7[%c0_15, %c0_16, %c0_17] : memref<1x8x4xf32, #tpu.memory_space<vmem>>, vector<1x8x4xf32>
    %20 = vector.shape_cast %19 : vector<1x8x4xf32> to vector<8x4xf32>
    %21 = arith.addf %20, %12 : vector<8x4xf32>
    %c0_18 = arith.constant 0 : index
    %c0_19 = arith.constant 0 : index
    %c0_20 = arith.constant 0 : index
    %22 = vector.load %arg7[%c0_18, %c0_19, %c0_20] : memref<1x8x4xf32, #tpu.memory_space<vmem>>, vector<1x8x4xf32>
    %23 = vector.shape_cast %22 : vector<1x8x4xf32> to vector<8x4xf32>
    %24 = vector.shape_cast %21 : vector<8x4xf32> to vector<1x8x4xf32>
    tpu.vector_store %arg7[%c0_18, %c0_19, %c0_20], %24 {strides = array<i32>} : memref<1x8x4xf32, #tpu.memory_space<vmem>>, vector<1x8x4xf32>,
    %c0_21 = arith.constant 0 : index
    %c0_22 = arith.constant 0 : index
    %c0_23 = arith.constant 0 : index
    %25 = vector.load %arg8[%c0_21, %c0_22, %c0_23] : memref<1x4x4xf32, #tpu.memory_space<vmem>>, vector<1x4x4xf32>
    %26 = vector.shape_cast %25 : vector<1x4x4xf32> to vector<4x4xf32>
    %27 = arith.addf %26, %13 : vector<4x4xf32>
    %c0_24 = arith.constant 0 : index
    %c0_25 = arith.constant 0 : index
    %c0_26 = arith.constant 0 : index
    %28 = vector.load %arg8[%c0_24, %c0_25, %c0_26] : memref<1x4x4xf32, #tpu.memory_space<vmem>>, vector<1x4x4xf32>
    %29 = vector.shape_cast %28 : vector<1x4x4xf32> to vector<4x4xf32>
    %30 = vector.shape_cast %27 : vector<4x4xf32> to vector<1x4x4xf32>
    tpu.vector_store %arg8[%c0_24, %c0_25, %c0_26], %30 {strides = array<i32>} : memref<1x4x4xf32, #tpu.memory_space<vmem>>, vector<1x4x4xf32>,
    %c0_27 = arith.constant 0 : index
    %c0_28 = arith.constant 0 : index
    %c0_29 = arith.constant 0 : index
    %31 = vector.load %arg9[%c0_27, %c0_28, %c0_29] : memref<1x4x1xf32, #tpu.memory_space<vmem>>, vector<1x4x1xf32>
    %32 = vector.shape_cast %31 : vector<1x4x1xf32> to vector<4x1xf32>
    %33 = arith.addf %32, %15 : vector<4x1xf32>
    %c0_30 = arith.constant 0 : index
    %c0_31 = arith.constant 0 : index
    %c0_32 = arith.constant 0 : index
    %34 = vector.load %arg9[%c0_30, %c0_31, %c0_32] : memref<1x4x1xf32, #tpu.memory_space<vmem>>, vector<1x4x1xf32>
    %35 = vector.shape_cast %34 : vector<1x4x1xf32> to vector<4x1xf32>
    %36 = vector.shape_cast %33 : vector<4x1xf32> to vector<1x4x1xf32>
    tpu.vector_store %arg9[%c0_30, %c0_31, %c0_32], %36 {strides = array<i32>} : memref<1x4x1xf32, #tpu.memory_space<vmem>>, vector<1x4x1xf32>,
    return
  }
  func.func @transform_0(%arg0: i32, %arg1: i32) -> (i32, i32, i32) {
    %c0_i32 = arith.constant 0 : i32
    %c0_i32_0 = arith.constant 0 : i32
    return %arg0, %c0_i32, %arg1 : i32, i32, i32
  }
  func.func @transform_1(%arg0: i32, %arg1: i32) -> (i32, i32) {
    %c0_i32 = arith.constant 0 : i32
    %c0_i32_0 = arith.constant 0 : i32
    %c0_i32_1 = arith.constant 0 : i32
    return %c0_i32, %c0_i32_0 : i32, i32
  }
  func.func @transform_2(%arg0: i32, %arg1: i32) -> (i32, i32) {
    %c0_i32 = arith.constant 0 : i32
    %c0_i32_0 = arith.constant 0 : i32
    %c0_i32_1 = arith.constant 0 : i32
    return %c0_i32, %c0_i32_0 : i32, i32
  }
  func.func @transform_3(%arg0: i32, %arg1: i32) -> (i32, i32) {
    %c0_i32 = arith.constant 0 : i32
    %c0_i32_0 = arith.constant 0 : i32
    %c0_i32_1 = arith.constant 0 : i32
    return %c0_i32, %c0_i32_0 : i32, i32
  }
  func.func @transform_4(%arg0: i32, %arg1: i32) -> (i32, i32) {
    %c0_i32 = arith.constant 0 : i32
    %c0_i32_0 = arith.constant 0 : i32
    %c0_i32_1 = arith.constant 0 : i32
    return %c0_i32, %c0_i32_0 : i32, i32
  }
  func.func @transform_5(%arg0: i32, %arg1: i32) -> (i32, i32, i32) {
    %c0_i32 = arith.constant 0 : i32
    %c0_i32_0 = arith.constant 0 : i32
    %c0_i32_1 = arith.constant 0 : i32
    return %arg0, %c0_i32, %c0_i32_0 : i32, i32, i32
  }
  func.func @transform_6(%arg0: i32, %arg1: i32) -> (i32, i32, i32) {
    %c0_i32 = arith.constant 0 : i32
    %c0_i32_0 = arith.constant 0 : i32
    %c0_i32_1 = arith.constant 0 : i32
    return %arg0, %c0_i32, %c0_i32_0 : i32, i32, i32
  }
  func.func @transform_7(%arg0: i32, %arg1: i32) -> (i32, i32, i32) {
    %c0_i32 = arith.constant 0 : i32
    %c0_i32_0 = arith.constant 0 : i32
    %c0_i32_1 = arith.constant 0 : i32
    return %arg0, %c0_i32, %c0_i32_0 : i32, i32, i32
  }
}

</mosaic_0001>

<bundles_post_ra>
// kernel: glore_unit_pallas.2
= control target key start
LH: loop header
LB: loop body
LE: loop exit
PB: predicated region body
PF: predicated region fallthrough
CT: control target
= control target key end

     0   :  { %s956_s24 = smov 0   ;;  %s958_s25 = smov 0   ;;  %s1056_s0 = inlined_call_operand.vmem [shape: f32[2,4,256], index: 0, kind: input, shape index: {}]   ;;  %s1057_s1 = inlined_call_operand.vmem [shape: f32[8,4], index: 1, kind: input, shape index: {}]   ;;  %s1058_s2 = inlined_call_operand.vmem [shape: f32[8,1], index: 2, kind: input, shape index: {}]   ;;  %s1059_s3 = inlined_call_operand.vmem [shape: f32[4,4], index: 3, kind: input, shape index: {}]   ;;  %s1060_s4 = inlined_call_operand.vmem [shape: f32[4,1], index: 4, kind: input, shape index: {}]   ;;  %s1061_s5 = inlined_call_operand.vmem [shape: f32[2,8,4], index: 5, kind: output, shape index: {0}]   ;;  %s1062_s6 = inlined_call_operand.vmem [shape: f32[2,4,4], index: 6, kind: output, shape index: {1}]   ;;  %s1063_s7 = inlined_call_operand.vmem [shape: f32[2,4,1], index: 7, kind: output, shape index: {2}]  }
   0x1   :  { %s960_s26 = smov 0   ;;  %s962_s27 = smov 0  }
   0x2   :  { %s964_s28 = smov 0  }
   0x3 LB: > { %s27_s29 = sadd.s32 1, %s902_s26  ;;  %s30_s30 = sadd.s32 1, %s906_s27  ;;  %s910_s28 = sphi %s964_s28, %s18_s28   ;;  %s906_s27 = sphi %s962_s27, %s1067_s27   ;;  %s902_s26 = sphi %s960_s26, %s1066_s26   ;;  %s898_s25 = sphi %s958_s25, %s1065_s25   ;;  %s894_s24 = sphi %s956_s24, %s1064_s24  }
   0x4   : > { %p28_p0 = scmp.ge.s32.totalorder %s27_s29, 2  ;;  %p786_p1 = scmp.ge.s32.totalorder %s910_s28, 1 }
   0x5   : > { %p259_p2 = scmp.lt.s32.totalorder %s910_s28, 5 }
   0x6   : > { %s1069_s29 = smov (%p28_p0, %s27_s29), 0  ;;  %s1071_s30 = smov (!%p28_p0, %s30_s30), %s906_s27 }
   0x7   : > { %p260_p3 = pnand %p786_p1, %p259_p2  ;;  %p32_p4 = scmp.ge.s32.totalorder %s1071_s30, 2 }
   0x8   : > { %p301_p5 = scmp.lt.s32.totalorder (!%p260_p3), %s898_s25, 1  ;;  %p303_p6 = scmp.lt.s32.totalorder (!%p260_p3), %s894_s24, 1 }
   0x9   : > { %s1073_s30 = smov (%p32_p4, %s1071_s30), 0  ;;  %263 = sbr.rel (%p260_p3) target bundleno = 430 (0x1ae), region = 40 }
   0xa   : > { %p796_p7 = scmp.ne.s32.totalorder (!%p260_p3), %s894_s24, 0 }
   0xe   : > { %v912_v0 = vmov 0.0   ;;  %v408_v1 = vld [vmem:[%s1060_s4] sm:$0xf]  ;;  %s1075_s25 = smov (!%p301_p5, %s898_s25), 1  ;;  %vm913_vm0 = vmmov 0   ;;  %v914_v2 = vmov 0  }
   0xf   : > { %807 = vmatprep.subr.mxu0 %v912_v0  ;;  %812 = vmatprep.subr.mxu1 %v912_v0  ;;  %s304_s10 = scalar_select %p303_p6, %s894_s24, 1  ;;  %v323_v3 = vld [vmem:[%s1058_s2] sm:$0xff]  ;;  %vm333_vm1 = vcmask 1043456   ;;  %vm329_vm2 = vcmask 31744  }
  0x10   : > { %809 = vmatprep.mubr.msk.f32.mxu0 %vm913_vm0, %v912_v0  ;;  %814 = vmatprep.mubr.msk.f32.mxu1 %vm913_vm0, %v912_v0  ;;  %s787_s11 = sshll.u32 %s1075_s25, 1  ;;  %s789_s12 = sshll.u32 %s1075_s25, 3  ;;  %v322_v4 = vld [vmem:[%s1057_s1] sm:$0xff] }
  0x11   : > { %871 = vset.pattern.permute.xlu0 %v914_v2  ;;  %s306_s13 = sadd.s32 %s787_s11, %s304_s10  ;;  %s998_s16 = scalar_lea.vmem %s1061_s5, %s789_s12  ;;  %v407_v5 = vld [vmem:[%s1059_s3] sm:$0xf] }
  0x12   : > { %411 = vperm.xlu0 %871, %v408_v1   ;;  %s788_s19 = sshll.u32 %s306_s13, 2  ;;  %s790_s20 = sshll.u32 %s1075_s25, 2 }
  0x13   : > { %s308_s23 = scalar_lea.vmem %s1056_s0, %s788_s19  ;;  %s1009_s10 = scalar_lea.vmem %s1062_s6, %s790_s20 }
  0x14   : > { %s1020_s17 = scalar_lea.vmem %s1063_s7, %s790_s20  ;;  %v321_v6 = vld [vmem:[%s308_s23] sm:$0xf] }
  0x15   : > { %808 = vmatpush3.msk.msra.mxu0 %vm333_vm1, %v321_v6  ;;  %813 = vmatpush3.msk.msra.mxu1 %vm333_vm1, %v321_v6 }
  0x16   : > { %326 = vperm.xlu0 %871, %v323_v3   ;;  %810 = vmatmul.mubr.msk.f32.vlgmr.msra.gmra.mxu0 %vm329_vm2, %v322_v4 }
  0x17   : > { %815 = vmatmul.mubr.msk.f32.vlgmr.msra.gmra.mxu1 %vm329_vm2, %v407_v5  ;;  %817 = vmatprep.subr.mxu0 %v912_v0 }
  0x18   : > { %822 = vmatprep.subr.mxu1 %v912_v0  ;;  %819 = vmatprep.mubr.msk.f32.mxu0 %vm913_vm0, %v912_v0 }
  0x19   : > { %824 = vmatprep.mubr.msk.f32.mxu1 %vm913_vm0, %v912_v0 }
  0x8d   : > { %v412_v7 = vpop.permute.xlu0 %411 }
  0x91   : > { %v327_v10 = vpop.permute.xlu0 %326 }
  0xd6   : > { %v403_v8 = vpop.f32.mrf.mxu0 }
  0xd7   : > { %v483_v9 = vpop.f32.mrf.mxu1  ;;  %v404_v15 = vadd.f32 %v403_v8, %v327_v10 }
  0xd8   : > { %v484_v11 = vadd.f32 %v483_v9, %v412_v7  ;;  %v811_v13 = vpop.f32.mrf.mxu0 }
  0xd9   : > { %v816_v12 = vpop.f32.mrf.mxu1 }
  0xda   : > { %818 = vmatpush3.xpose.msra.mxu0 %v484_v11  ;;  %823 = vmatpush3.xpose.msra.mxu1 %v484_v11  ;;  %v627_v14 = vsel %vm333_vm1, %v484_v11, 0.0 }
  0xdb   : > { %628 = vadd.xlane.f32.xlu1 %v627_v14 }
  0xdd   : > { %820 = vmatmul.mubr.f32.vlgmr.msra.gmra.mxu0 %v404_v15  ;;  %825 = vmatmul.mubr.f32.vlgmr.msra.gmra.mxu1 %v484_v11 }
 0x164   : > { %v629_v16 = vpop.xlane.xlu1 %628 }
 0x19b   : > { %633 = sbr.rel (%p796_p7) target bundleno = 420 (0x1a4), region = 44 }
 0x19d   : > { %v553_v17 = vpop.f32.mrf.mxu0  ;;  %v623_v18 = vpop.f32.mrf.mxu1 }
 0x19f   : > { %v821_v19 = vpop.f32.mrf.mxu0  ;;  %v826_v20 = vpop.f32.mrf.mxu1 }
 0x1a0   : > { %vm635_vm3 = vcmask 27648   ;;  %vm637_vm4 = vcmask 3072   ;;  %v915_v21 = vmov 0.0  }
 0x1a1   : > { %634 = vst.msk [vmem:[%s998_s16] sm:$0xff] %vm329_vm2, %v915_v21 }
 0x1a2   : > { %636 = vst.msk [vmem:[%s1009_s10] sm:$0xf] %vm635_vm3, %v915_v21 }
 0x1a3   : > { %638 = vst.msk [vmem:[%s1020_s17] sm:$0xf] %vm637_vm4, %v915_v21 }
 0x1a4 PF: > { %vm644_vm5 = vcmask 27648   ;;  %vm648_vm6 = vcmask 3072  }
 0x1a8   : > { %v639_v22 = vld [vmem:[%s998_s16] sm:$0xff] }
 0x1a9   : > { %v642_v23 = vld [vmem:[%s1009_s10] sm:$0xf]  ;;  %v640_v25 = vadd.f32 %v639_v22, %v553_v17 }
 0x1aa   : > { %v646_v24 = vld [vmem:[%s1020_s17] sm:$0xf]  ;;  %v643_v26 = vadd.f32 %v642_v23, %v623_v18 }
 0x1ab   : > { %v647_v27 = vadd.f32 %v646_v24, %v629_v16  ;;  %641 = vst.msk [vmem:[%s998_s16] sm:$0xff] %vm329_vm2, %v640_v25 }
 0x1ac   : > { %645 = vst.msk [vmem:[%s1009_s10] sm:$0xf] %vm644_vm5, %v643_v26 }
 0x1ad   : > { %649 = vst.msk [vmem:[%s1020_s17] sm:$0xf] %vm648_vm6, %v647_v27 }
 0x1ae PF: > { %s18_s28 = sadd.s32 1, %s910_s28   ;;  %s1064_s24 = smov %s902_s26 }
 0x1af   : > { %p15_p8 = scmp.ge.s32.totalorder %s18_s28, 6   ;;  %s1065_s25 = smov %s906_s27 }
 0x1b0   : > { %s1066_s26 = smov %s1069_s29  ;;  %s1067_s27 = smov %s1073_s30 }
 0x1b1   :  { %17 = sbr.rel (!%p15_p8) target bundleno = 3 (0x3), region = 98 }

// kernel: glore_unit_pallas.3
= control target key start
LH: loop header
LB: loop body
LE: loop exit
PB: predicated region body
PF: predicated region fallthrough
CT: control target
= control target key end

     0   :  { %s730_s21 = smov 0   ;;  %s732_s22 = smov 0   ;;  %s798_s0 = inlined_call_operand.vmem [shape: f32[2,4,256], index: 0, kind: input, shape index: {}, may-alias: {0,6}]   ;;  %s799_s1 = inlined_call_operand.vmem [shape: f32[2,4,4], index: 1, kind: input, shape index: {}]   ;;  %s800_s2 = inlined_call_operand.vmem [shape: f32[4,4], index: 2, kind: input, shape index: {}]   ;;  %s801_s3 = inlined_call_operand.vmem [shape: f32[4,1], index: 3, kind: input, shape index: {}]   ;;  %s802_s4 = inlined_call_operand.vmem [shape: f32[4,1], index: 4, kind: input, shape index: {}]   ;;  %s803_s5 = inlined_call_operand.vmem [shape: f32[4,1], index: 5, kind: input, shape index: {}]   ;;  %s804_s6 = inlined_call_operand.vmem [shape: f32[2,4,256], index: 6, kind: output, shape index: {}, may-alias: {0,6}]  }
   0x1   :  { %s734_s23 = smov 0   ;;  %s736_s24 = smov 0  }
   0x2   :  { %s738_s25 = smov 0  }
   0x3 LB: > { %s25_s26 = sadd.s32 1, %s682_s23  ;;  %s28_s27 = sadd.s32 1, %s686_s24  ;;  %s690_s25 = sphi %s738_s25, %s16_s25   ;;  %s686_s24 = sphi %s736_s24, %s808_s24   ;;  %s682_s23 = sphi %s734_s23, %s807_s23   ;;  %s678_s22 = sphi %s732_s22, %s806_s22   ;;  %s674_s21 = sphi %s730_s21, %s805_s21  }
   0x4   : > { %p26_p0 = scmp.ge.s32.totalorder %s25_s26, 2  ;;  %p581_p1 = scmp.ge.s32.totalorder %s690_s25, 1 }
   0x5   : > { %p240_p2 = scmp.lt.s32.totalorder %s690_s25, 5 }
   0x6   : > { %s810_s26 = smov (%p26_p0, %s25_s26), 0  ;;  %s812_s27 = smov (!%p26_p0, %s28_s27), %s686_s24 }
   0x7   : > { %p241_p3 = pnand %p581_p1, %p240_p2  ;;  %p30_p4 = scmp.ge.s32.totalorder %s812_s27, 2 }
   0x8   : > { %p280_p5 = scmp.lt.s32.totalorder (!%p241_p3), %s678_s22, 1  ;;  %p282_p6 = scmp.lt.s32.totalorder (!%p241_p3), %s674_s21, 1 }
   0x9   : > { %s814_s27 = smov (%p30_p4, %s812_s27), 0  ;;  %244 = sbr.rel (%p241_p3) target bundleno = 417 (0x1a1), region = 44 }
   0xe   : > { %v692_v0 = vmov 0.0   ;;  %vm693_vm0 = vmmov 0   ;;  %v302_v1 = vld [vmem:[%s801_s3] sm:$0xf]  ;;  %s816_s22 = smov (!%p280_p5, %s678_s22), 1  ;;  %v694_v2 = vmov 0  }
   0xf   : > { %597 = vmatprep.subr.mxu0 %v692_v0  ;;  %599 = vmatprep.mubr.msk.f32.mxu0 %vm693_vm0, %v692_v0  ;;  %s818_s21 = smov (!%p282_p6, %s674_s21), 1  ;;  %s582_s30 = sshll.u32 %s816_s22, 1  ;;  %v463_v3 = vld [vmem:[%s802_s4] sm:$0xf]  ;;  %vm312_vm1 = vcmask 1043456   ;;  %vm308_vm2 = vcmask 31744  }
  0x10   : > { %650 = vset.pattern.permute.xlu0 %v694_v2  ;;  %602 = vmatprep.subr.mxu1 %v692_v0  ;;  %s285_s9 = sadd.s32 %s582_s30, %s818_s21  ;;  %v301_v4 = vld [vmem:[%s800_s2] sm:$0xf]  ;;  %s584_s18 = sshll.u32 %s816_s22, 2 }
  0x11   : > { %305 = vperm.xlu0 %650, %v302_v1   ;;  %604 = vmatprep.mubr.msk.f32.mxu1 %vm693_vm0, %v692_v0  ;;  %s583_s10 = sshll.u32 %s285_s9, 2  ;;  %v471_v6 = vld [vmem:[%s803_s5] sm:$0xf]  ;;  %s291_s21 = scalar_lea.vmem %s799_s1, %s584_s18 }
  0x12   : > { %651 = vset.pattern.permute.xlu1 %v694_v2  ;;  %s287_s13 = scalar_lea.vmem %s798_s0, %s583_s10  ;;  %v386_v10 = vld [vmem:[%s291_s21] sm:$0xf]  ;;  %s299_s29 = scalar_lea.vmem %s804_s6, %s583_s10 }
  0x13   : > { %v300_v5 = vld [vmem:[%s287_s13] sm:$0xf]  ;;  %474 = vperm.xlu1 %651, %v471_v6  }
  0x14   : > { %598 = vmatpush3.msk.msra.mxu0 %vm312_vm1, %v300_v5 }
  0x15   : > { %466 = vperm.xlu0 %650, %v463_v3   ;;  %600 = vmatmul.mubr.msk.f32.vlgmr.msra.gmra.mxu0 %vm308_vm2, %v301_v4 }
  0x8c   : > { %v306_v7 = vpop.permute.xlu0 %305 }
  0x8e   : > { %v475_v16 = vpop.permute.xlu1 %474 }
  0x90   : > { %v467_v12 = vpop.permute.xlu0 %466 }
  0xd5   : > { %v382_v8 = vpop.f32.mrf.mxu0 }
  0xd6   : > { %v383_v9 = vadd.f32 %v382_v8, %v306_v7 }
  0xd7   : > { %v601_v11 = vpop.f32.mrf.mxu0 }
  0xd8   : > { %603 = vmatpush3.msk.msra.mxu1 %vm312_vm1, %v383_v9 }
  0xd9   : > { %605 = vmatmul.mubr.msk.f32.vlgmr.msra.gmra.mxu1 %vm308_vm2, %v386_v10 }
 0x199   : > { %v459_v13 = vpop.f32.mrf.mxu1 }
 0x19a   : > { %v469_v14 = vmul.f32 %v467_v12, %v459_v13 }
 0x19b   : > { %v606_v15 = vpop.f32.mrf.mxu1 }
 0x19c   : > { %v470_v17 = vadd.f32 %v469_v14, %v300_v5 }
 0x19e   : > { %v477_v18 = vadd.f32 %v475_v16, %v470_v17 }
 0x1a0   : > { %478 = vst [vmem:[%s299_s29] sm:$0xf] %v477_v18 }
 0x1a1 PF: > { %s16_s25 = sadd.s32 1, %s690_s25   ;;  %s805_s21 = smov %s682_s23 }
 0x1a2   : > { %p13_p7 = scmp.ge.s32.totalorder %s16_s25, 6   ;;  %s806_s22 = smov %s686_s24 }
 0x1a3   : > { %s807_s23 = smov %s810_s26  ;;  %s808_s24 = smov %s814_s27 }
 0x1a4   :  { %15 = sbr.rel (!%p13_p7) target bundleno = 3 (0x3), region = 77 }

</bundles_post_ra>
